<compile_context>
chip_gen: v6e
topology: v6e:2x2x1
jax: 0.10.0
libtpu: 0.0.40
codegen_flags: <defaults>
</compile_context>

<pallas_src>
import functools

import jax
import jax.numpy as jnp
from jax.experimental import pallas as pl
from jax.experimental.pallas import tpu as pltpu


def _topk_gate_kernel(x_ref, w1_ref, w2_ref,
                      scores_ref, idx_ref, imp_ref, load_ref,
                      *, num_selects, num_valid_rows):
    """One token tile: gate MLP -> top-k -> softmax -> partial importance/load."""
    i = pl.program_id(0)

    x = x_ref[...]                                   # (TB, D), f32 or bf16
    w1 = w1_ref[...]                                 # (D, E),  f32 or bf16
    w2 = w2_ref[...].astype(jnp.float32)             # (E, E),  tiny; cast once

    # gate_network == 'mlp': Linear(D,E) -> Tanh -> Linear(E,E), f32 accumulation.
    h = jnp.tanh(jnp.dot(x, w1, preferred_element_type=jnp.float32))      # (TB, E)
    logits = jnp.dot(h, w2, preferred_element_type=jnp.float32)           # (TB, E)

    TB, E = logits.shape
    S = num_selects
    NEG = jnp.float32(-1e30)
    BIG = jnp.float32(1e9)

    iota_e = jax.lax.broadcasted_iota(jnp.int32, (TB, E), 1)
    iota_f = iota_e.astype(jnp.float32)

    # Iterative top-S selection (argmax via max + masked index-min; ties -> smallest idx).
    work = logits
    sel_mask = jnp.zeros((TB, E), dtype=jnp.float32)
    top_vals = []   # S x (TB, 1)
    top_idx = []    # S x (TB, 1) int32
    for _ in range(S):
        v = jnp.max(work, axis=1, keepdims=True)                          # (TB, 1)
        is_max = work == v
        idx = jnp.min(jnp.where(is_max, iota_f, BIG),
                      axis=1, keepdims=True).astype(jnp.int32)            # (TB, 1)
        hit = iota_e == idx
        sel_mask = jnp.where(hit, 1.0, sel_mask)
        work = jnp.where(hit, NEG, work)
        top_vals.append(v)
        top_idx.append(idx)

    # Softmax over the selected top-k logits, scattered back onto the expert axis
    # (== zeros.scatter(dim=1, index, softmax(top_k_logits))).
    v0 = top_vals[0]                                      # row-wise max (top-1)
    exp_sel = jnp.exp(logits - v0) * sel_mask             # (TB, E)
    denom = jnp.sum(exp_sel, axis=1, keepdims=True)       # (TB, 1)
    inv_denom = pl.reciprocal(denom, approx=True)         # EUP slot
    scores_filtered = exp_sel * inv_denom                 # (TB, E)

    # Single store of the (TB, S) outputs; one exp over all S columns.
    tv = jnp.concatenate(top_vals, axis=1)                # (TB, S)
    ti = jnp.concatenate(top_idx, axis=1)                 # (TB, S) int32
    scores_ref[...] = (jnp.exp(tv - v0) * inv_denom).astype(scores_ref.dtype)
    idx_ref[...] = ti

    # Per-tile partial importance / load; mask rows that are padding (B % TB != 0).
    row = i * TB + jax.lax.broadcasted_iota(jnp.int32, (TB, 1), 0)
    valid = (row < num_valid_rows).astype(jnp.float32)    # (TB, 1)
    sf = scores_filtered * valid
    imp_ref[...] = jnp.sum(sf, axis=0, keepdims=True)                      # (1, E)
    load_ref[...] = jnp.sum((sf > 0).astype(jnp.float32),
                            axis=0, keepdims=True)                         # (1, E)


def topk_balanced_noisy_gate(x, w_gate1, w_gate2, num_selects,
                             balance_loss_weight=0.01,
                             block_rows=512,
                             vmem_limit_bytes=48 * 1024 * 1024):
    """Eval-path forward of TopKBalancedNoisyGate.

    x: (B, D) (f32 or bf16); w_gate1: (D, E); w_gate2: (E, E).
    Returns dict matching the PyTorch module (indices are int32, not int64).
    """
    B, D = x.shape
    E = w_gate1.shape[1]
    S = num_selects
    assert S <= E

    # Token tile: single tile for small B, otherwise a lane/sublane friendly tile.
    # Default 512 rows keeps double-buffered f32 x tiles well inside v7x's 64 MiB
    # VMEM even for D=4096 (2 * 512 * 4096 * 4B = 16 MiB); bf16 halves that.
    if B <= block_rows:
        TB = B
    else:
        assert block_rows % 128 == 0, "block_rows must be a multiple of 128 when tiling"
        TB = block_rows
    num_tiles = pl.cdiv(B, TB)
    B_pad = num_tiles * TB
    x_in = x if B_pad == B else jnp.pad(x, ((0, B_pad - B), (0, 0)))

    kernel = functools.partial(_topk_gate_kernel,
                               num_selects=S,
                               num_valid_rows=B)

    out_shape = (
        jax.ShapeDtypeStruct((B_pad, S), jnp.float32),      # topK_scores
        jax.ShapeDtypeStruct((B_pad, S), jnp.int32),        # topK_indices
        jax.ShapeDtypeStruct((num_tiles, E), jnp.float32),  # importance partials
        jax.ShapeDtypeStruct((num_tiles, E), jnp.float32),  # load partials
    )

    grid_spec = pltpu.PrefetchScalarGridSpec(
        num_scalar_prefetch=0,
        grid=(num_tiles,),
        in_specs=[
            pl.BlockSpec((TB, D), lambda i: (i, 0)),        # x: tiled over tokens
            pl.BlockSpec((D, E), lambda i: (0, 0)),         # W1: VMEM-resident
            pl.BlockSpec((E, E), lambda i: (0, 0)),         # W2: VMEM-resident
        ],
        out_specs=[
            pl.BlockSpec((TB, S), lambda i: (i, 0)),
            pl.BlockSpec((TB, S), lambda i: (i, 0)),
            pl.BlockSpec((1, E), lambda i: (i, 0)),
            pl.BlockSpec((1, E), lambda i: (i, 0)),
        ],
    )

    scores, idx, imp_p, load_p = pl.pallas_call(
        kernel,
        out_shape=out_shape,
        grid_spec=grid_spec,
        compiler_params=pltpu.CompilerParams(
            dimension_semantics=("parallel",),              # shard token tiles over TCs
            vmem_limit_bytes=vmem_limit_bytes,
        ),
    )(x_in, w_gate1, w_gate2)

    scores = scores[:B]
    idx = idx[:B]
    importance = imp_p.sum(axis=0)                          # (E,) full reduction
    load = load_p.sum(axis=0)                               # (E,)

    def cv_squared(v, eps=1e-10):
        # torch.var() is unbiased (ddof=1); returns 0 for a length-1 tensor.
        if v.shape[0] == 1:
            return jnp.asarray(0.0, jnp.float32)
        m = jnp.mean(v)
        return jnp.var(v, ddof=1) / (m * m + eps)

    balance_loss = (cv_squared(importance) + cv_squared(load)) * balance_loss_weight

    return {
        "topK_indices": idx,            # int32 (PyTorch returns int64)
        "topK_scores": scores,          # f32 (PyTorch casts back to logits dtype)
        "balance_loss": balance_loss,
        "load": load,                   # float32 counts (eval path)
        "importance": importance,
    }


def _reference(x, w1, w2, S, balance_loss_weight=0.01):
    x = x.astype(jnp.float32)
    logits = jnp.tanh(x @ w1.astype(jnp.float32)) @ w2.astype(jnp.float32)
    E = logits.shape[1]
    k = min(S + 1, E)
    tv, ti = jax.lax.top_k(logits, k)
    tk_v, tk_i = tv[:, :S], ti[:, :S]
    tk_s = jax.nn.softmax(tk_v.astype(jnp.float32), axis=1)
    sf = jnp.zeros_like(logits).at[jnp.arange(x.shape[0])[:, None], tk_i].set(tk_s)
    importance = sf.sum(0)
    load = (sf > 0).sum(0).astype(jnp.float32)

    def cv(v):
        m = v.mean()
        var = jnp.sum((v - m) ** 2) / (v.shape[0] - 1)
        return var / (m * m + 1e-10)

    loss = balance_loss_weight * (cv(importance) + cv(load))
    return tk_i, tk_s, importance, load, loss


if __name__ == "__main__":
    # ---- small single-tile case: strict check against the pure-JAX reference ----
    B, D, E, S = 8, 32, 8, 2   # tokens, input_size, num_experts, num_selects
    key = jax.random.PRNGKey(0)
    kx, k1, k2 = jax.random.split(key, 3)
    x = jax.random.normal(kx, (B, D), dtype=jnp.float32)
    # PyTorch nn.Linear default init: U(-1/sqrt(fan_in), 1/sqrt(fan_in))
    w1 = jax.random.uniform(k1, (D, E), jnp.float32,
                            minval=-1.0 / (D ** 0.5), maxval=1.0 / (D ** 0.5))
    w2 = jax.random.uniform(k2, (E, E), jnp.float32,
                            minval=-1.0 / (E ** 0.5), maxval=1.0 / (E ** 0.5))

    out = topk_balanced_noisy_gate(x, w1, w2, S)
    out = jax.tree_util.tree_map(jax.block_until_ready, out)

    ref_i, ref_s, ref_imp, ref_load, ref_loss = _reference(x, w1, w2, S)
    assert jnp.array_equal(out["topK_indices"], ref_i.astype(jnp.int32))
    assert jnp.allclose(out["topK_scores"], ref_s, atol=2e-3, rtol=2e-3)
    assert jnp.allclose(out["importance"], ref_imp, atol=2e-3, rtol=2e-3)
    assert jnp.allclose(out["load"], ref_load, atol=1e-6)
    assert jnp.allclose(out["balance_loss"], ref_loss, atol=2e-3, rtol=2e-3)

    # ---- multi-tile case: exercises tiling, padding, parallel grid, partial reduce ----
    B2, D2 = 300, 128
    kx2, k12, k22 = jax.random.split(jax.random.PRNGKey(1), 3)
    x2 = jax.random.normal(kx2, (B2, D2), dtype=jnp.float32)
    w12 = jax.random.uniform(k12, (D2, E), jnp.float32,
                             minval=-1.0 / (D2 ** 0.5), maxval=1.0 / (D2 ** 0.5))
    w22 = jax.random.uniform(k22, (E, E), jnp.float32,
                             minval=-1.0 / (E ** 0.5), maxval=1.0 / (E ** 0.5))
    out2 = topk_balanced_noisy_gate(x2, w12, w22, S, block_rows=128)
    out2 = jax.tree_util.tree_map(jax.block_until_ready, out2)
    r_i, r_s, r_imp, r_load, r_loss = _reference(x2, w12, w22, S)
    idx_ok = jnp.all(out2["topK_indices"] == r_i.astype(jnp.int32), axis=1)
    sc_ok = jnp.all(jnp.abs(out2["topK_scores"] - r_s) < 2e-3, axis=1)
    # tolerate a rare near-tie flip from f32 accumulation-order differences
    assert jnp.mean((idx_ok & sc_ok).astype(jnp.float32)) >= 0.99
    assert jnp.allclose(out2["importance"], r_imp, rtol=5e-2, atol=0.5)
    assert jnp.allclose(out2["load"], r_load, atol=2.0)
    assert jnp.allclose(out2["balance_loss"], r_loss, rtol=5e-2, atol=1e-3)

    # ---- bf16 activations/weights smoke run (halves HBM traffic for x) ----
    out_bf = topk_balanced_noisy_gate(x.astype(jnp.bfloat16),
                                      w1.astype(jnp.bfloat16), w2, S)
    out_bf = jax.tree_util.tree_map(jax.block_until_ready, out_bf)
    row_sums = jnp.sum(out_bf["topK_scores"], axis=1)
    assert jnp.allclose(row_sums, jnp.ones_like(row_sums), atol=2e-2)
    assert bool(jnp.all((out_bf["topK_indices"] >= 0) & (out_bf["topK_indices"] < E)))

    print("KERNEL_OK")
</pallas_src>

<mosaic_0001>
module attributes {stable_mosaic.version = 11 : i64} {
  func.func @_topk_gate_kernel(%arg0: i32, %arg1: memref<8x32xf32, #tpu.memory_space<vmem>>, %arg2: memref<32x8xf32, #tpu.memory_space<vmem>>, %arg3: memref<8x8xf32, #tpu.memory_space<vmem>>, %arg4: memref<8x2xf32, #tpu.memory_space<vmem>>, %arg5: memref<8x2xi32, #tpu.memory_space<vmem>>, %arg6: memref<1x8xf32, #tpu.memory_space<vmem>>, %arg7: memref<1x8xf32, #tpu.memory_space<vmem>>) attributes {dimension_semantics = [#tpu.dimension_semantics<parallel>], iteration_bounds = array<i64: 1>, scalar_prefetch = 0 : i64, scratch_operands = 0 : i64, tpu.core_type = #tpu.core_type<tc>, window_params = [{transform_indices = @transform_0, window_bounds = array<i64: 8, 32>}, {pipeline_mode = #tpu.pipeline_mode<synchronous>, transform_indices = @transform_1, window_bounds = array<i64: 32, 8>}, {pipeline_mode = #tpu.pipeline_mode<synchronous>, transform_indices = @transform_2, window_bounds = array<i64: 8, 8>}, {transform_indices = @transform_3, window_bounds = array<i64: 8, 2>}, {transform_indices = @transform_4, window_bounds = array<i64: 8, 2>}, {transform_indices = @transform_5, window_bounds = array<i64: 1, 8>}, {transform_indices = @transform_6, window_bounds = array<i64: 1, 8>}]} {
    %c0 = arith.constant 0 : index
    %c0_0 = arith.constant 0 : index
    %0 = vector.load %arg1[%c0, %c0_0] : memref<8x32xf32, #tpu.memory_space<vmem>>, vector<8x32xf32>
    %c0_1 = arith.constant 0 : index
    %c0_2 = arith.constant 0 : index
    %1 = vector.load %arg2[%c0_1, %c0_2] : memref<32x8xf32, #tpu.memory_space<vmem>>, vector<32x8xf32>
    %c0_3 = arith.constant 0 : index
    %c0_4 = arith.constant 0 : index
    %2 = vector.load %arg3[%c0_3, %c0_4] : memref<8x8xf32, #tpu.memory_space<vmem>>, vector<8x8xf32>
    %cst = arith.constant dense<0.000000e+00> : vector<8x8xf32>
    %3 = tpu.matmul %0, %1, %cst {dimension_numbers = #tpu.dot_dimension_numbers<[1], [0], [0], [1], [0, 0, 1, 1], [], []>} : vector<8x32xf32>, vector<32x8xf32>, vector<8x8xf32> -> vector<8x8xf32>
    %4 = math.tanh %3 : vector<8x8xf32>
    %cst_5 = arith.constant dense<0.000000e+00> : vector<8x8xf32>
    %5 = tpu.matmul %4, %2, %cst_5 {dimension_numbers = #tpu.dot_dimension_numbers<[1], [0], [0], [1], [0, 0, 1, 1], [], []>} : vector<8x8xf32>, vector<8x8xf32>, vector<8x8xf32> -> vector<8x8xf32>
    %6 = tpu.iota {dimensions = array<i32: 1>} : vector<8x8xi32>
    %7 = arith.sitofp %6 : vector<8x8xi32> to vector<8x8xf32>
    %cst_6 = arith.constant 0.000000e+00 : f32
    %8 = vector.broadcast %cst_6 : f32 to vector<8x8xf32>
    %cst_7 = arith.constant dense<0xFF800000> : vector<8xf32>
    %9 = vector.multi_reduction <maximumf>, %5, %cst_7 [1] : vector<8x8xf32> to vector<8xf32>
    %10 = vector.shape_cast %9 : vector<8xf32> to vector<8x1xf32>
    %11 = vector.broadcast %10 : vector<8x1xf32> to vector<8x8xf32>
    %12 = arith.cmpf oeq, %5, %11 : vector<8x8xf32>
    %cst_8 = arith.constant 1.000000e+09 : f32
    %13 = vector.broadcast %cst_8 : f32 to vector<8x8xf32>
    %14 = arith.select %12, %7, %13 : vector<8x8xi1>, vector<8x8xf32>
    %cst_9 = arith.constant dense<0x7F800000> : vector<8xf32>
    %15 = vector.multi_reduction <minimumf>, %14, %cst_9 [1] : vector<8x8xf32> to vector<8xf32>
    %16 = vector.shape_cast %15 : vector<8xf32> to vector<8x1xf32>
    %17 = arith.fptosi %16 : vector<8x1xf32> to vector<8x1xi32>
    %18 = vector.broadcast %17 : vector<8x1xi32> to vector<8x8xi32>
    %19 = arith.cmpi eq, %6, %18 : vector<8x8xi32>
    %cst_10 = arith.constant 1.000000e+00 : f32
    %20 = vector.broadcast %cst_10 : f32 to vector<8x8xf32>
    %21 = arith.select %19, %20, %8 : vector<8x8xi1>, vector<8x8xf32>
    %cst_11 = arith.constant -1.000000e+30 : f32
    %22 = vector.broadcast %cst_11 : f32 to vector<8x8xf32>
    %23 = arith.select %19, %22, %5 : vector<8x8xi1>, vector<8x8xf32>
    %cst_12 = arith.constant dense<0xFF800000> : vector<8xf32>
    %24 = vector.multi_reduction <maximumf>, %23, %cst_12 [1] : vector<8x8xf32> to vector<8xf32>
    %25 = vector.shape_cast %24 : vector<8xf32> to vector<8x1xf32>
    %26 = vector.broadcast %25 : vector<8x1xf32> to vector<8x8xf32>
    %27 = arith.cmpf oeq, %23, %26 : vector<8x8xf32>
    %cst_13 = arith.constant 1.000000e+09 : f32
    %28 = vector.broadcast %cst_13 : f32 to vector<8x8xf32>
    %29 = arith.select %27, %7, %28 : vector<8x8xi1>, vector<8x8xf32>
    %cst_14 = arith.constant dense<0x7F800000> : vector<8xf32>
    %30 = vector.multi_reduction <minimumf>, %29, %cst_14 [1] : vector<8x8xf32> to vector<8xf32>
    %31 = vector.shape_cast %30 : vector<8xf32> to vector<8x1xf32>
    %32 = arith.fptosi %31 : vector<8x1xf32> to vector<8x1xi32>
    %33 = vector.broadcast %32 : vector<8x1xi32> to vector<8x8xi32>
    %34 = arith.cmpi eq, %6, %33 : vector<8x8xi32>
    %cst_15 = arith.constant 1.000000e+00 : f32
    %35 = vector.broadcast %cst_15 : f32 to vector<8x8xf32>
    %36 = arith.select %34, %35, %21 : vector<8x8xi1>, vector<8x8xf32>
    %37 = vector.broadcast %10 : vector<8x1xf32> to vector<8x8xf32>
    %38 = arith.subf %5, %37 : vector<8x8xf32>
    %39 = math.exp %38 : vector<8x8xf32>
    %40 = arith.mulf %39, %36 : vector<8x8xf32>
    %cst_16 = arith.constant dense<0.000000e+00> : vector<8xf32>
    %41 = vector.multi_reduction <add>, %40, %cst_16 [1] : vector<8x8xf32> to vector<8xf32>
    %42 = vector.shape_cast %41 : vector<8xf32> to vector<8x1xf32>
    %43 = tpu.reciprocal %42 {approx = true} : vector<8x1xf32> -> vector<8x1xf32>
    %44 = vector.broadcast %43 : vector<8x1xf32> to vector<8x8xf32>
    %45 = arith.mulf %40, %44 : vector<8x8xf32>
    %46 = tpu.concatenate %10, %25 in 1 : vector<8x1xf32>, vector<8x1xf32> -> vector<8x2xf32>
    %47 = tpu.concatenate %17, %32 in 1 : vector<8x1xi32>, vector<8x1xi32> -> vector<8x2xi32>
    %48 = vector.broadcast %10 : vector<8x1xf32> to vector<8x2xf32>
    %49 = arith.subf %46, %48 : vector<8x2xf32>
    %50 = math.exp %49 : vector<8x2xf32>
    %51 = vector.broadcast %43 : vector<8x1xf32> to vector<8x2xf32>
    %52 = arith.mulf %50, %51 : vector<8x2xf32>
    %c0_17 = arith.constant 0 : index
    %c0_18 = arith.constant 0 : index
    %53 = vector.load %arg4[%c0_17, %c0_18] : memref<8x2xf32, #tpu.memory_space<vmem>>, vector<8x2xf32>
    tpu.vector_store %arg4[%c0_17, %c0_18], %52 {strides = array<i32>} : memref<8x2xf32, #tpu.memory_space<vmem>>, vector<8x2xf32>,
    %c0_19 = arith.constant 0 : index
    %c0_20 = arith.constant 0 : index
    %54 = vector.load %arg5[%c0_19, %c0_20] : memref<8x2xi32, #tpu.memory_space<vmem>>, vector<8x2xi32>
    tpu.vector_store %arg5[%c0_19, %c0_20], %47 {strides = array<i32>} : memref<8x2xi32, #tpu.memory_space<vmem>>, vector<8x2xi32>,
    %c8_i32 = arith.constant 8 : i32
    %55 = arith.muli %arg0, %c8_i32 : i32
    %56 = tpu.iota {dimensions = array<i32: 0>} : vector<8x1xi32>
    %57 = vector.broadcast %55 : i32 to vector<8x1xi32>
    %58 = arith.addi %57, %56 : vector<8x1xi32>
    %c8_i32_21 = arith.constant 8 : i32
    %59 = vector.broadcast %c8_i32_21 : i32 to vector<8x1xi32>
    %60 = arith.cmpi slt, %58, %59 : vector<8x1xi32>
    %61 = arith.extui %60 : vector<8x1xi1> to vector<8x1xi32>
    %62 = arith.sitofp %61 : vector<8x1xi32> to vector<8x1xf32>
    %63 = vector.broadcast %62 : vector<8x1xf32> to vector<8x8xf32>
    %64 = arith.mulf %45, %63 : vector<8x8xf32>
    %cst_22 = arith.constant dense<0.000000e+00> : vector<8xf32>
    %65 = vector.multi_reduction <add>, %64, %cst_22 [0] : vector<8x8xf32> to vector<8xf32>
    %66 = vector.shape_cast %65 : vector<8xf32> to vector<1x8xf32>
    %c0_23 = arith.constant 0 : index
    %c0_24 = arith.constant 0 : index
    %67 = vector.load %arg6[%c0_23, %c0_24] : memref<1x8xf32, #tpu.memory_space<vmem>>, vector<1x8xf32>
    tpu.vector_store %arg6[%c0_23, %c0_24], %66 {strides = array<i32>} : memref<1x8xf32, #tpu.memory_space<vmem>>, vector<1x8xf32>,
    %cst_25 = arith.constant 0.000000e+00 : f32
    %68 = vector.broadcast %cst_25 : f32 to vector<8x8xf32>
    %69 = arith.cmpf ogt, %64, %68 : vector<8x8xf32>
    %70 = arith.extui %69 : vector<8x8xi1> to vector<8x8xi32>
    %71 = arith.sitofp %70 : vector<8x8xi32> to vector<8x8xf32>
    %cst_26 = arith.constant dense<0.000000e+00> : vector<8xf32>
    %72 = vector.multi_reduction <add>, %71, %cst_26 [0] : vector<8x8xf32> to vector<8xf32>
    %73 = vector.shape_cast %72 : vector<8xf32> to vector<1x8xf32>
    %c0_27 = arith.constant 0 : index
    %c0_28 = arith.constant 0 : index
    %74 = vector.load %arg7[%c0_27, %c0_28] : memref<1x8xf32, #tpu.memory_space<vmem>>, vector<1x8xf32>
    tpu.vector_store %arg7[%c0_27, %c0_28], %73 {strides = array<i32>} : memref<1x8xf32, #tpu.memory_space<vmem>>, vector<1x8xf32>,
    return
  }
  func.func @transform_0(%arg0: i32) -> (i32, i32) {
    %c0_i32 = arith.constant 0 : i32
    %c0_i32_0 = arith.constant 0 : i32
    return %arg0, %c0_i32 : i32, i32
  }
  func.func @transform_1(%arg0: i32) -> (i32, i32) {
    %c0_i32 = arith.constant 0 : i32
    %c0_i32_0 = arith.constant 0 : i32
    %c0_i32_1 = arith.constant 0 : i32
    return %c0_i32, %c0_i32_0 : i32, i32
  }
  func.func @transform_2(%arg0: i32) -> (i32, i32) {
    %c0_i32 = arith.constant 0 : i32
    %c0_i32_0 = arith.constant 0 : i32
    %c0_i32_1 = arith.constant 0 : i32
    return %c0_i32, %c0_i32_0 : i32, i32
  }
  func.func @transform_3(%arg0: i32) -> (i32, i32) {
    %c0_i32 = arith.constant 0 : i32
    %c0_i32_0 = arith.constant 0 : i32
    return %arg0, %c0_i32 : i32, i32
  }
  func.func @transform_4(%arg0: i32) -> (i32, i32) {
    %c0_i32 = arith.constant 0 : i32
    %c0_i32_0 = arith.constant 0 : i32
    return %arg0, %c0_i32 : i32, i32
  }
  func.func @transform_5(%arg0: i32) -> (i32, i32) {
    %c0_i32 = arith.constant 0 : i32
    %c0_i32_0 = arith.constant 0 : i32
    return %arg0, %c0_i32 : i32, i32
  }
  func.func @transform_6(%arg0: i32) -> (i32, i32) {
    %c0_i32 = arith.constant 0 : i32
    %c0_i32_0 = arith.constant 0 : i32
    return %arg0, %c0_i32 : i32, i32
  }
}

</mosaic_0001>

<bundles_post_ra>
// kernel: tpu_custom_call.1
= control target key start
LH: loop header
LB: loop body
LE: loop exit
PB: predicated region body
PF: predicated region fallthrough
CT: control target
= control target key end

     0   :  { %12 = vsyncpa [#allocation3], 0  ;;  %v371_v1 = vmov 0.0   ;;  %vm372_vm0 = vmmov 0   ;;  %s463_s0 = inlined_call_operand.vmem [shape: f32[8,32], index: 0, kind: input, shape index: {}]   ;;  %s464_s1 = inlined_call_operand.vmem [shape: f32[32,8], index: 1, kind: input, shape index: {}]   ;;  %s465_s2 = inlined_call_operand.vmem [shape: f32[8,8], index: 2, kind: input, shape index: {}]   ;;  %s466_s3 = inlined_call_operand.vmem [shape: f32[8,2], index: 3, kind: output, shape index: {0}]   ;;  %s467_s4 = inlined_call_operand.vmem [shape: s32[8,2], index: 4, kind: output, shape index: {1}]   ;;  %s468_s5 = inlined_call_operand.hbm [shape: f32[1,8], index: 5, kind: output, shape index: {2}]   ;;  %s469_s6 = inlined_call_operand.hbm [shape: f32[1,8], index: 6, kind: output, shape index: {3}]  }
   0x1   :  { %v24_v0 = vld [vmem:[%s464_s1 + $0x18] sm:$0xff]  ;;  %295 = vmatprep.subr.mxu0 %v371_v1  ;;  %v23_v2 = vld [vmem:[%s464_s1 + $0x10] sm:$0xff]  ;;  %303 = vmatprep.mubr.msk.f32.mxu0 %vm372_vm0, %v371_v1 }
   0x2   :  { %13 = vsyncpa [#allocation5], 0  ;;  %296 = vmatpush3.msra.mxu0 %v24_v0  ;;  %306 = vmatprep.subr.mxu1 %v371_v1  ;;  %v22_v3 = vld [vmem:[%s464_s1 + $0x8] sm:$0xff]  ;;  %v21_v4 = vld [vmem:[%s464_s1] sm:$0xff]  ;;  %vm26_vm1 = vcmask 261120   ;;  %vm101_vm2 = vcmask 64512   ;;  %v175_v13 = vlaneseq }
   0x3   :  { %297 = vmatprep.subr.mxu0 %v371_v1  ;;  %308 = vmatprep.mubr.msk.f32.mxu1 %vm372_vm0, %v371_v1  ;;  %v20_v5 = vld [vmem:[%s463_s0] sm:$0xff]  ;;  %vm217_vm6 = vcmask 15360   ;;  %vm210_vm7 = vcmask 7168   ;;  %vm236_vm10 = vcmask 57344  }
   0x4   :  { %298 = vmatpush3.msra.mxu0 %v23_v2  ;;  %v25_v6 = vld [vmem:[%s465_s2] sm:$0xff]  ;;  %v176_v14 = vand.u32 127, %v175_v13 }
   0x5   :  { %299 = vmatprep.subr.mxu0 %v371_v1  ;;  %307 = vmatpush3.msra.mxu1 %v25_v6 }
   0x6   :  { %300 = vmatpush3.msra.mxu0 %v22_v3  ;;  %v177_v15 = vcvt.s32.f32 %v176_v14 }
   0x7   :  { %301 = vmatprep.subr.mxu0 %v371_v1 }
   0x8   :  { %302 = vmatpush3.msra.mxu0 %v21_v4 }
   0x9   :  { %304 = vmatmul.mubr.msk.f32.vlgmr.msra.gmra.mxu0 %vm26_vm1, %v20_v5 }
  0xc9   :  { %v96_v7 = vpop.f32.mrf.mxu0 }
  0xca   :  { %319 = vtanh.f32 %v96_v7 }
  0xcb   :  { %v305_v8 = vpop.f32.mrf.mxu0 }
  0xd7   :  { %v320_v9 = vpop.eup %319 }
  0xd8   :  { %309 = vmatmul.mubr.msk.f32.vlgmr.msra.gmra.mxu1 %vm101_vm2, %v320_v9 }
 0x198   :  { %v171_v10 = vpop.f32.mrf.mxu1 }
 0x199   :  { %v178_v11 = vsel %vm101_vm2, %v171_v10, -inf }
 0x19a   :  { %179 = vmax.xlane.f32.xlu0 %v178_v11  ;;  %v310_v12 = vpop.f32.mrf.mxu1 }
 0x223   :  { %v180_v16 = vpop.xlane.xlu0 %179 }
 0x224   :  { %vm181_vm3 = vcmp.eq.f32.partialorder %v171_v10, %v180_v16  ;;  %v201_v27 = vsub.f32 %v171_v10, %v180_v16 }
 0x225   :  { %v182_v17 = vsel %vm181_vm3, %v177_v15, 1e+09 }
 0x226   :  { %v183_v18 = vsel %vm101_vm2, %v182_v17, inf  ;;  %v202_v28 = vmul.f32 1.442695, %v201_v27 }
 0x227   :  { %184 = vmin.xlane.f32.xlu0 %v183_v18 }
 0x228   :  { %321 = vpow2.f32 %v202_v28 }
 0x235   :  { %v322_v34 = vpop.eup %321 }
 0x2b0   :  { %v185_v19 = vpop.xlane.xlu0 %184 }
 0x2b1   :  { %v311_v20 = vtrunc.f32 %v185_v19 }
 0x2b3   :  { %v312_v21 = vcvt.f32.s32 %v311_v20 }
 0x2b5   :  { %vm187_vm4 = vcmp.eq.s32.totalorder %v176_v14, %v312_v21 }
 0x2b6   :  { %v189_v22 = vsel %vm187_vm4, -1e+30, %v171_v10  ;;  %v188_v32 = vsel %vm187_vm4, 1.0, %v371_v1 }
 0x2b7   :  { %v190_v23 = vsel %vm101_vm2, %v189_v22, -inf }
 0x2b8   :  { %191 = vmax.xlane.f32.xlu1 %v190_v23 }
 0x341   :  { %v192_v24 = vpop.xlane.xlu1 %191 }
 0x342   :  { %vm193_vm5 = vcmp.eq.f32.partialorder %v189_v22, %v192_v24  ;;  %v211_v38 = vsel %vm210_vm7, %v180_v16, %v192_v24 }
 0x343   :  { %v194_v25 = vsel %vm193_vm5, %v177_v15, 1e+09  ;;  %v213_v39 = vsub.f32 %v211_v38, %v180_v16 }
 0x344   :  { %v195_v26 = vsel %vm101_vm2, %v194_v25, inf }
 0x345   :  { %196 = vmin.xlane.f32.xlu1 %v195_v26  ;;  %v214_v40 = vmul.f32 1.442695, %v213_v39 }
 0x347   :  { %323 = vpow2.f32 %v214_v40 }
 0x354   :  { %v324_v42 = vpop.eup %323 }
 0x3ce   :  { %v197_v29 = vpop.xlane.xlu1 %196 }
 0x3cf   :  { %v313_v30 = vtrunc.f32 %v197_v29 }
 0x3d1   :  { %v314_v31 = vcvt.f32.s32 %v313_v30 }
 0x3d3   :  { %vm199_vm8 = vcmp.eq.s32.totalorder %v176_v14, %v314_v31  ;;  %v212_v33 = vsel %vm210_vm7, %v312_v21, %v314_v31 }
 0x3d4   :  { %v200_v35 = vsel %vm199_vm8, 1.0, %v188_v32  ;;  %219 = vst.msk [vmem:[%s467_s4] sm:$0xff] %vm217_vm6, %v212_v33  ;;  %s373_s4 = smov [#allocation2]  }
 0x3d5   :  { %v204_v36 = vmul.f32 %v322_v34, %v200_v35  ;;  %s259_s10 = sshll.u32 %s373_s4, 4  ;;  %s260_s10 = int_to_ptr.vmem [resolvable:$true] %s259_s10 }
 0x3d6   :  { %s327_s12 = scalar_lea.vmem %s260_s10, 16  ;;  %s331_s13 = scalar_lea.vmem %s260_s10, 32 }
 0x3d7   :  { %v205_v37 = vsel %vm101_vm2, %v204_v36, 0.0  ;;  %p328_p0 = scmp.ne.s32.totalorder %s260_s10, %s327_s12  ;;  %p332_p1 = scmp.lt.s32.totalorder %s260_s10, %s260_s10 }
 0x3d8   :  { %206 = vadd.xlane.f32.xlu0 %v205_v37  ;;  %p333_p2 = scmp.lt.s32.totalorder %s331_s13, %s327_s12 }
 0x3da   :  { %p334_p3 = por %p333_p2, %p332_p1 }
 0x3dc   :  { %p335_p4 = pnand %p334_p3, %p328_p0 }
 0x461   :  { %v207_v41 = vpop.xlane.xlu0 %206 }
 0x462   :  { %325 = vrcp.f32 %v207_v41 }
 0x46f   :  { %v326_v43 = vpop.eup %325 }
 0x470   :  { %v216_v44 = vmul.f32 %v326_v43, %v324_v42  ;;  %v209_v45 = vmul.f32 %v326_v43, %v204_v36 }
 0x472   :  { %218 = vst.msk [vmem:[%s466_s3] sm:$0xff] %vm217_vm6, %v216_v44  ;;  %v229_v46 = vsel %vm101_vm2, %v209_v45, 0.0  ;;  %vm238_vm9 = vcmp.gt.f32.partialorder %v209_v45, 0.0  ;;  %s374_s3 = smov [#allocation4]  }
 0x473   :  { %v230_v47 = vrot.slane %v229_v46, 4  ;;  %v287_v48 = vsel %vm238_vm9, 1.0, %v371_v1  ;;  %s269_s11 = sshll.u32 %s374_s3, 4  ;;  %s270_s11 = int_to_ptr.vmem [resolvable:$true] %s269_s11 }
 0x474   :  { %v241_v49 = vsel %vm101_vm2, %v287_v48, 0.0 }
 0x475   :  { %v231_v50 = vadd.f32 %v230_v47, %v229_v46  ;;  %v242_v51 = vrot.slane %v241_v49, 4 }
 0x477   :  { %v232_v52 = vrot.slane %v231_v50, 2  ;;  %v243_v53 = vadd.f32 %v242_v51, %v241_v49 }
 0x479   :  { %v233_v54 = vadd.f32 %v232_v52, %v231_v50  ;;  %v244_v55 = vrot.slane %v243_v53, 2 }
 0x47b   :  { %v234_v56 = vrot.slane %v233_v54, 1  ;;  %v245_v57 = vadd.f32 %v244_v55, %v243_v53 }
 0x47d   :  { %v235_v58 = vadd.f32 %v234_v56, %v233_v54  ;;  %v246_v59 = vrot.slane %v245_v57, 1 }
 0x47f   :  { %237 = vst.msk [vmem:[#allocation2] sm:$0x1] %vm236_vm10, %v235_v58  ;;  %v247_v60 = vadd.f32 %v246_v59, %v245_v57 }
 0x480   :  { %338 = shalt.err (!%p335_p4)
}
 0x481   :  { %262 = dma.vmem_to_hbm [thread:$0]  %s260_s10, 16, %s468_s5, [#allocation3]   ;;  %248 = vst.msk [vmem:[#allocation4] sm:$0x1] %vm236_vm10, %v247_v60 }
 0x482   :  { %s347_s16 = scalar_lea.vmem %s270_s11, 16  ;;  %s351_s17 = scalar_lea.vmem %s270_s11, 32 }
 0x483   :  { %p348_p5 = scmp.ne.s32.totalorder %s270_s11, %s347_s16  ;;  %p352_p6 = scmp.lt.s32.totalorder %s270_s11, %s270_s11 }
 0x484   :  { %p353_p7 = scmp.lt.s32.totalorder %s351_s17, %s347_s16 }
 0x486   :  { %p354_p8 = por %p353_p7, %p352_p6 }
 0x488   :  { %p355_p9 = pnand %p354_p8, %p348_p5 }
 0x48a   :  { %358 = shalt.err (!%p355_p9)
}
 0x48b   :  { %272 = dma.vmem_to_hbm [thread:$0]  %s270_s11, 16, %s469_s6, [#allocation5]  }
 0x48c   :  { %367 = dma.done.wait [#allocation3], 16  }
 0x48d   :  { %368 = vsyncadd [#allocation3], 4294967280 }
 0x48e   :  { %369 = dma.done.wait [#allocation5], 16  }
 0x48f   :  { %370 = vsyncadd [#allocation5], 4294967280 }
 0x490   :  { %283 = vsyncpa [#allocation3], 1 }
 0x491   :  { %284 = vsyncpa [#allocation5], 1 }

</bundles_post_ra>
